<compile_context>
chip_gen: v6e
topology: v6e:2x2x1
jax: 0.10.0
libtpu: 0.0.40
codegen_flags: <defaults>
</compile_context>

<pallas_src>
import functools

import jax
import jax.numpy as jnp
from jax.experimental import pallas as pl
from jax.experimental.pallas import tpu as pltpu

HIDDEN = 20   # hidden_sizes = [20, 20]
OUT = 1       # output_dim = 1


def _cdiv(a, b):
    return -(-a // b)


def _round_up(x, m):
    return ((x + m - 1) // m) * m


def _mlp_kernel(x_ref, p_ref, o_ref, *, F):
    """One row-tile of the 3-layer tanh MLP.

    x_ref: (tile, F)      natural (row-major) input tile, rows on sublanes
    p_ref: (20,  F+24)    packed [W1 | b1 | W2 | b2 | W3^T | b3] slab (resident)
    o_ref: (1,   tile)    lane-dense per-row score
    """
    x = x_ref[...]                                   # (tile, F)
    P = p_ref[...]                                   # (20, F+24)

    c = 0
    w1 = P[:, c:c + F];            c += F            # (20, F)
    b1 = P[:, c:c + 1];            c += 1            # (20, 1)
    w2 = P[:, c:c + HIDDEN];       c += HIDDEN       # (20, 20)
    b2 = P[:, c:c + 1];            c += 1            # (20, 1)
    w3 = P[:, c:c + 1];            c += 1            # (20, 1)  == W3^T
    b3 = P[0:1, c:c + 1]                             # (1, 1)

    # Layer 1: contract the F axes of W1 (20,F) and x (tile,F) -> (20, tile).
    # Result is already lane-dense (rows on lanes); no HBM transpose needed.
    z1 = jax.lax.dot_general(w1, x, (((1,), (1,)), ((), ())),
                             preferred_element_type=jnp.float32) + b1
    h1 = jnp.tanh(z1)                                # (20, tile)

    # Layer 2: standard (20,20) @ (20,tile).
    z2 = jnp.dot(w2, h1, preferred_element_type=jnp.float32) + b2
    h2 = jnp.tanh(z2)                                # (20, tile)

    # Layer 3: single output unit -> broadcast-mul + sublane reduce.
    o_ref[...] = jnp.sum(w3 * h2, axis=0, keepdims=True) + b3   # (1, tile)


@functools.partial(jax.jit, static_argnames=("tile_r",))
def drlns_forward(obs, packed_params, tile_r=16384):
    """Forward pass of DRLNSNet.

    obs:            (B, N, F) float32 (factors per station)
    packed_params:  (20, F+24) float32 slab from pack_params()
    returns logits of shape (B, N)  (== logits.view(B, -1) since output_dim=1)
    """
    B, N, F = obs.shape
    rows = B * N
    x = obs.astype(jnp.float32).reshape(rows, F)     # free view: no transpose, no pad

    # Row tile: multiple of 128 (lane-dense output stores), >= 2 grid steps
    # whenever rows >= 256 (v7x megacore + DMA/compute overlap), capped by
    # tile_r (re-derive tile_r for the VMEM budget of the target generation).
    half = _round_up(_cdiv(rows, 2), 128)
    tile = max(128, min(_round_up(tile_r, 128), half))
    grid = (_cdiv(rows, tile),)                      # ragged last block handled by Pallas

    out = pl.pallas_call(
        functools.partial(_mlp_kernel, F=F),
        out_shape=jax.ShapeDtypeStruct((OUT, rows), jnp.float32),
        grid_spec=pltpu.PrefetchScalarGridSpec(
            num_scalar_prefetch=0,
            grid=grid,
            in_specs=[
                pl.BlockSpec((tile, F), lambda i: (i, 0)),           # X tile, natural layout
                pl.BlockSpec((HIDDEN, F + 24), lambda i: (0, 0)),    # packed params, resident
            ],
            out_specs=pl.BlockSpec((OUT, tile), lambda i: (0, i)),   # lane-dense scores
        ),
        compiler_params=pltpu.CompilerParams(
            dimension_semantics=("parallel",),
            vmem_limit_bytes=48 * 1024 * 1024,
        ),
    )(x, packed_params)

    return out[0].reshape(B, N * OUT)                # == logits.view(B, -1)


def init_params(key, in_dim):
    """Deterministic init mimicking torch.nn.Linear defaults (Kaiming-uniform).

    Weights stored torch-native (out, in); biases 1-D (out,).
    """
    def linear(k, fan_in, fan_out):
        kw, kb = jax.random.split(k)
        bound = 1.0 / jnp.sqrt(float(fan_in))
        w = jax.random.uniform(kw, (fan_out, fan_in), jnp.float32, -bound, bound)
        b = jax.random.uniform(kb, (fan_out,), jnp.float32, -bound, bound)
        return w, b

    k1, k2, k3 = jax.random.split(key, 3)
    w1, b1 = linear(k1, in_dim, HIDDEN)
    w2, b2 = linear(k2, HIDDEN, HIDDEN)
    w3, b3 = linear(k3, HIDDEN, OUT)
    return (w1, b1, w2, b2, w3, b3)


def pack_params(params):
    """Pack (W1,b1,W2,b2,W3,b3) into one (20, F+24) f32 slab.

    Columns: [0,F)=W1 | F=b1 | [F+1,F+21)=W2 | F+21=b2 | F+22=W3^T | F+23=b3.
    """
    w1, b1, w2, b2, w3, b3 = params
    return jnp.concatenate(
        [
            w1,                                            # (20, F)
            b1[:, None],                                   # (20, 1)
            w2,                                            # (20, 20)
            b2[:, None],                                   # (20, 1)
            w3.T,                                          # (20, 1)  W3^T
            jnp.full((HIDDEN, 1), b3[0], dtype=jnp.float32),  # (20, 1) b3 broadcast
        ],
        axis=1,
    ).astype(jnp.float32)


def _reference(obs, params):
    """Pure-JAX f32 reference of the same MLP (weights stored (out, in))."""
    w1, b1, w2, b2, w3, b3 = params
    h1 = jnp.tanh(obs @ w1.T + b1)
    h2 = jnp.tanh(h1 @ w2.T + b2)
    out = h2 @ w3.T + b3
    return out.reshape(obs.shape[0], -1)


if __name__ == "__main__":
    key = jax.random.PRNGKey(0)
    k_obs, k_obs2, k_par = jax.random.split(key, 3)

    # state_shape = (num_stations, factors_per_station) -> input_dim = state_shape[1]
    B, N, F = 2, 8, 4
    obs = jax.random.normal(k_obs, (B, N, F), dtype=jnp.float32)
    params = init_params(k_par, F)
    packed = pack_params(params)

    # Tiny case: single grid step (128-lane tile, partial block, masked store).
    logits = drlns_forward(obs, packed)
    jax.block_until_ready(logits)
    ref = _reference(obs, params)
    assert logits.shape == (B, N), logits.shape
    assert jnp.allclose(logits, ref, atol=2e-5, rtol=2e-5)

    # Multi-step path with a ragged last block (no padding anywhere).
    B2, N2 = 3, 300                       # 900 rows -> tile 512, grid 2
    obs2 = jax.random.normal(k_obs2, (B2, N2, F), dtype=jnp.float32)
    logits2 = drlns_forward(obs2, packed)
    jax.block_until_ready(logits2)
    ref2 = _reference(obs2, params)
    assert logits2.shape == (B2, N2), logits2.shape
    assert jnp.allclose(logits2, ref2, atol=2e-5, rtol=2e-5)

    # Smaller explicit tile -> grid 4 with a ragged tail (exercises tile_r path).
    logits3 = drlns_forward(obs2, packed, tile_r=256)
    jax.block_until_ready(logits3)
    assert jnp.allclose(logits3, ref2, atol=2e-5, rtol=2e-5)

    # `state` passthrough of the torch forward: (logits, None)
    result = (logits, None)
    print("KERNEL_OK")
</pallas_src>

<mosaic_0001>
module attributes {stable_mosaic.version = 11 : i64} {
  func.func @_mlp_kernel(%arg0: i32, %arg1: memref<128x4xf32, #tpu.memory_space<vmem>>, %arg2: memref<20x28xf32, #tpu.memory_space<vmem>>, %arg3: memref<1x128xf32, #tpu.memory_space<vmem>>) attributes {dimension_semantics = [#tpu.dimension_semantics<parallel>], iteration_bounds = array<i64: 1>, scalar_prefetch = 0 : i64, scratch_operands = 0 : i64, tpu.core_type = #tpu.core_type<tc>, window_params = [{transform_indices = @transform_0, window_bounds = array<i64: 128, 4>}, {pipeline_mode = #tpu.pipeline_mode<synchronous>, transform_indices = @transform_1, window_bounds = array<i64: 20, 28>}, {transform_indices = @transform_2, window_bounds = array<i64: 1, 128>}]} {
    %c0 = arith.constant 0 : index
    %c0_0 = arith.constant 0 : index
    %0 = vector.load %arg1[%c0, %c0_0] : memref<128x4xf32, #tpu.memory_space<vmem>>, vector<128x4xf32>
    %c0_1 = arith.constant 0 : index
    %c0_2 = arith.constant 0 : index
    %1 = vector.load %arg2[%c0_1, %c0_2] : memref<20x28xf32, #tpu.memory_space<vmem>>, vector<20x28xf32>
    %2 = vector.extract_strided_slice %1 {offsets = [0, 0], sizes = [20, 4], strides = [1, 1]} : vector<20x28xf32> to vector<20x4xf32>
    %3 = vector.extract_strided_slice %1 {offsets = [0, 4], sizes = [20, 1], strides = [1, 1]} : vector<20x28xf32> to vector<20x1xf32>
    %4 = vector.extract_strided_slice %1 {offsets = [0, 5], sizes = [20, 20], strides = [1, 1]} : vector<20x28xf32> to vector<20x20xf32>
    %5 = vector.extract_strided_slice %1 {offsets = [0, 25], sizes = [20, 1], strides = [1, 1]} : vector<20x28xf32> to vector<20x1xf32>
    %6 = vector.extract_strided_slice %1 {offsets = [0, 26], sizes = [20, 1], strides = [1, 1]} : vector<20x28xf32> to vector<20x1xf32>
    %7 = vector.extract_strided_slice %1 {offsets = [0, 27], sizes = [1, 1], strides = [1, 1]} : vector<20x28xf32> to vector<1x1xf32>
    %cst = arith.constant dense<0.000000e+00> : vector<20x128xf32>
    %8 = tpu.matmul %2, %0, %cst {dimension_numbers = #tpu.dot_dimension_numbers<[1], [1], [0], [0], [0, 0, 1, 0], [], []>} : vector<20x4xf32>, vector<128x4xf32>, vector<20x128xf32> -> vector<20x128xf32>
    %9 = vector.broadcast %3 : vector<20x1xf32> to vector<20x128xf32>
    %10 = arith.addf %8, %9 : vector<20x128xf32>
    %11 = math.tanh %10 : vector<20x128xf32>
    %cst_3 = arith.constant dense<0.000000e+00> : vector<20x128xf32>
    %12 = tpu.matmul %4, %11, %cst_3 {dimension_numbers = #tpu.dot_dimension_numbers<[1], [0], [0], [1], [0, 0, 1, 1], [], []>} : vector<20x20xf32>, vector<20x128xf32>, vector<20x128xf32> -> vector<20x128xf32>
    %13 = vector.broadcast %5 : vector<20x1xf32> to vector<20x128xf32>
    %14 = arith.addf %12, %13 : vector<20x128xf32>
    %15 = math.tanh %14 : vector<20x128xf32>
    %16 = vector.broadcast %6 : vector<20x1xf32> to vector<20x128xf32>
    %17 = arith.mulf %16, %15 : vector<20x128xf32>
    %cst_4 = arith.constant dense<0.000000e+00> : vector<128xf32>
    %18 = vector.multi_reduction <add>, %17, %cst_4 [0] : vector<20x128xf32> to vector<128xf32>
    %19 = vector.shape_cast %18 : vector<128xf32> to vector<1x128xf32>
    %20 = vector.broadcast %7 : vector<1x1xf32> to vector<1x128xf32>
    %21 = arith.addf %19, %20 : vector<1x128xf32>
    %c0_5 = arith.constant 0 : index
    %c0_6 = arith.constant 0 : index
    %22 = vector.load %arg3[%c0_5, %c0_6] : memref<1x128xf32, #tpu.memory_space<vmem>>, vector<1x128xf32>
    tpu.vector_store %arg3[%c0_5, %c0_6], %21 {strides = array<i32>} : memref<1x128xf32, #tpu.memory_space<vmem>>, vector<1x128xf32>,
    return
  }
  func.func @transform_0(%arg0: i32) -> (i32, i32) {
    %c0_i32 = arith.constant 0 : i32
    %c0_i32_0 = arith.constant 0 : i32
    return %arg0, %c0_i32 : i32, i32
  }
  func.func @transform_1(%arg0: i32) -> (i32, i32) {
    %c0_i32 = arith.constant 0 : i32
    %c0_i32_0 = arith.constant 0 : i32
    %c0_i32_1 = arith.constant 0 : i32
    return %c0_i32, %c0_i32_0 : i32, i32
  }
  func.func @transform_2(%arg0: i32) -> (i32, i32) {
    %c0_i32 = arith.constant 0 : i32
    %c0_i32_0 = arith.constant 0 : i32
    return %c0_i32, %arg0 : i32, i32
  }
}

</mosaic_0001>

<bundles_post_ra>
// kernel: squeeze.1
= control target key start
LH: loop header
LB: loop body
LE: loop exit
PB: predicated region body
PF: predicated region fallthrough
CT: control target
= control target key end

     0   :  { %s77_s0 = inlined_call_operand.vmem [shape: f32[16], index: 0, kind: input, shape index: {}]   ;;  %s78_s1 = inlined_call_operand.hbm [shape: f32[2,8], index: 1, kind: output, shape index: {}]  }
   0x1   :  { %v6_v0 = vld [vmem:[%s77_s0] sm:$0x1] }
   0x2   :  { %2 = vsyncpa [#allocation1], 0  ;;  %7 = vst [vmem:[#allocation3] sm:$0x1] %v6_v0  ;;  %vm9_vm0 = vcmask 64512   ;;  %s59_s0 = smov 120  }
   0x3   :  { %s60_s8 = smov [#allocation0]  }
   0x4   :  { %s29_s9 = sshll.u32 %s60_s8, 4  ;;  %s30_s9 = int_to_ptr.vmem [resolvable:$true] %s29_s9 }
   0x5   :  { %s37_s10 = scalar_lea.vmem %s30_s9, 32  ;;  %p42_p1 = scmp.lt.s32.totalorder %s30_s9, %s30_s9 }
   0x6   :  { %p38_p0 = scmp.ne.s32.totalorder %s30_s9, %s37_s10  ;;  %p43_p2 = scmp.lt.s32.totalorder %s37_s10, %s37_s10 }
   0x8   :  { %p44_p3 = por %p43_p2, %p42_p1 }
   0x9   :  { %v11_v1 = vld [vmem:[#allocation3] sm:$0x1]  }
   0xa   :  { %v8_v2 = vld [vmem:[#allocation3] sm:$0x1]   ;;  %12 = vrot.lane.b32.xlu0 %v11_v1, %s59_s0  ;;  %p45_p4 = pnand %p44_p3, %p38_p0 }
   0xb   :  { %10 = vst.msk [vmem:[#allocation2] sm:$0x1] %vm9_vm0, %v8_v2  }
  0x7c   :  { %v13_v3 = vpop.permute.xlu0 %12  }
  0x7d   :  { %16 = vst.msk [vmem:[#allocation2 + $0x1] sm:$0x1] %vm9_vm0, %v13_v3  }
  0x84   :  { %v21_v4 = vld [vmem:[#allocation2] sm:$0x3] }
  0x85   :  { %24 = vst [vmem:[#allocation0] sm:$0x3] %v21_v4 }
  0x86   :  { %48 = shalt.err (!%p45_p4)
}
  0x87   :  { %32 = dma.vmem_to_hbm [thread:$0]  %s30_s9, 32, %s78_s1, [#allocation1]  }
  0x88   :  { %57 = dma.done.wait [#allocation1], 32  }
  0x89   :  { %58 = vsyncadd [#allocation1], 4294967264 }
  0x8a   :  { %34 = vsyncpa [#allocation1], 1 }

// kernel: drlns_forward.1
= control target key start
LH: loop header
LB: loop body
LE: loop exit
PB: predicated region body
PF: predicated region fallthrough
CT: control target
= control target key end

     0   :  { %vm45_vm0 = vcmask 31744   ;;  %v459_v0 = vmov 0.0   ;;  %vm460_vm1 = vmmov 0   ;;  %v461_v2 = vmov 4   ;;  %s462_s23 = smov 123   ;;  %s608_s0 = inlined_call_operand.vmem [shape: f32[16,4], index: 0, kind: input, shape index: {}]   ;;  %s609_s1 = inlined_call_operand.vmem [shape: f32[20,28], index: 1, kind: input, shape index: {}]   ;;  %s610_s2 = inlined_call_operand.vmem [shape: f32[1,16], index: 2, kind: output, shape index: {}]  }
   0x1   :  { %377 = vmatprep.subr.mxu0 %v459_v0  ;;  %v26_v1 = vld [vmem:[%s608_s0 + $0x78] sm:$0xff]  ;;  %409 = vmatprep.mubr.msk.f32.mxu0 %vm460_vm1, %v459_v0  ;;  %v25_v3 = vld [vmem:[%s608_s0 + $0x70] sm:$0xff]  ;;  %v499_v4 = vld [vmem:[%s609_s1] sm:$0xff]  ;;  %v463_v21 = vmov 25   ;;  %v464_v22 = vmov 26   ;;  %v465_v23 = vmov 27  }
   0x2   :  { %378 = vmatpush3.xpose.msk.msra.mxu0 %vm45_vm0, %v26_v1  ;;  %441 = vset.pattern.permute.xlu1 %v461_v2  ;;  %v24_v5 = vld [vmem:[%s608_s0 + $0x68] sm:$0xff]  ;;  %v508_v6 = vld [vmem:[%s609_s1 + $0x10] sm:$0xf]  ;;  %v23_v7 = vld [vmem:[%s608_s0 + $0x60] sm:$0xff]  ;;  %vm208_vm2 = vcmask 1043456   ;;  %vm201_vm3 = vcmask 162816  }
   0x3   :  { %379 = vmatprep.subr.mxu0 %v459_v0  ;;  %440 = vset.pattern.permute.xlu0 %v461_v2  ;;  %v28_v8 = vld [vmem:[%s609_s1 + $0x8] sm:$0xff]  ;;  %v22_v9 = vld [vmem:[%s608_s0 + $0x58] sm:$0xff]  ;;  %v21_v10 = vld [vmem:[%s608_s0 + $0x50] sm:$0xff] }
   0x4   :  { %418 = vmatprep.subr.mxu1 %v459_v0  ;;  %424 = vmatprep.mubr.msk.f32.mxu1 %vm460_vm1, %v459_v0  ;;  %v20_v11 = vld [vmem:[%s608_s0 + $0x48] sm:$0xff]  ;;  %v19_v12 = vld [vmem:[%s608_s0 + $0x40] sm:$0xff]  ;;  %v18_v13 = vld [vmem:[%s608_s0 + $0x38] sm:$0xff] }
   0x5   :  { %32 = vperm.xlu1 %441, %v499_v4   ;;  %42 = vperm.xlu0 %440, %v508_v6   ;;  %v17_v14 = vld [vmem:[%s608_s0 + $0x30] sm:$0xff]  ;;  %v16_v15 = vld [vmem:[%s608_s0 + $0x28] sm:$0xff]  ;;  %v15_v16 = vld [vmem:[%s608_s0 + $0x20] sm:$0xff] }
   0x6   :  { %380 = vmatpush3.xpose.msk.msra.mxu0 %vm45_vm0, %v25_v3  ;;  %v14_v17 = vld [vmem:[%s608_s0 + $0x18] sm:$0xff]  ;;  %v13_v18 = vld [vmem:[%s608_s0 + $0x10] sm:$0xff]  ;;  %v12_v19 = vld [vmem:[%s608_s0 + $0x8] sm:$0xff] }
   0x7   :  { %381 = vmatprep.subr.mxu0 %v459_v0  ;;  %v11_v20 = vld [vmem:[%s608_s0] sm:$0xff] }
   0x9   :  { %195 = vrot.lane.b32.xlu1 %v499_v4, %s462_s23  ;;  %37 = vperm.xlu0 %440, %v28_v8  }
   0xa   :  { %382 = vmatpush3.xpose.msk.msra.mxu0 %vm45_vm0, %v24_v5  ;;  %443 = vset.pattern.permute.xlu1 %v463_v21 }
   0xb   :  { %383 = vmatprep.subr.mxu0 %v459_v0 }
   0xd   :  { %199 = vrot.lane.b32.xlu1 %v508_v6, %s462_s23  ;;  %197 = vrot.lane.b32.xlu0 %v28_v8, %s462_s23 }
   0xe   :  { %384 = vmatpush3.xpose.msk.msra.mxu0 %vm45_vm0, %v23_v7  ;;  %442 = vset.pattern.permute.xlu0 %v463_v21 }
   0xf   :  { %385 = vmatprep.subr.mxu0 %v459_v0 }
  0x11   :  { %184 = vperm.xlu0 %442, %v499_v4   ;;  %188 = vperm.xlu1 %443, %v28_v8  }
  0x12   :  { %386 = vmatpush3.xpose.msk.msra.mxu0 %vm45_vm0, %v22_v9 }
  0x13   :  { %387 = vmatprep.subr.mxu0 %v459_v0 }
  0x15   :  { %192 = vperm.xlu1 %443, %v508_v6   ;;  %444 = vset.pattern.permute.xlu0 %v464_v22 }
  0x16   :  { %388 = vmatpush3.xpose.msk.msra.mxu0 %vm45_vm0, %v21_v10  ;;  %296 = vperm.xlu0 %444, %v499_v4  }
  0x17   :  { %389 = vmatprep.subr.mxu0 %v459_v0 }
  0x19   :  { %445 = vset.pattern.permute.xlu1 %v464_v22 }
  0x1a   :  { %390 = vmatpush3.xpose.msk.msra.mxu0 %vm45_vm0, %v20_v11  ;;  %300 = vperm.xlu1 %445, %v28_v8  }
  0x1b   :  { %391 = vmatprep.subr.mxu0 %v459_v0  ;;  %446 = vset.pattern.permute.xlu0 %v465_v23 }
  0x1c   :  { %320 = vperm.xlu0 %446, %v499_v4  }
  0x1e   :  { %392 = vmatpush3.xpose.msk.msra.mxu0 %vm45_vm0, %v19_v12  ;;  %304 = vperm.xlu1 %445, %v508_v6  }
  0x1f   :  { %393 = vmatprep.subr.mxu0 %v459_v0 }
  0x22   :  { %394 = vmatpush3.xpose.msk.msra.mxu0 %vm45_vm0, %v18_v13 }
  0x23   :  { %395 = vmatprep.subr.mxu0 %v459_v0 }
  0x26   :  { %396 = vmatpush3.xpose.msk.msra.mxu0 %vm45_vm0, %v17_v14 }
  0x27   :  { %397 = vmatprep.subr.mxu0 %v459_v0 }
  0x2a   :  { %398 = vmatpush3.xpose.msk.msra.mxu0 %vm45_vm0, %v16_v15 }
  0x2b   :  { %399 = vmatprep.subr.mxu0 %v459_v0 }
  0x2e   :  { %400 = vmatpush3.xpose.msk.msra.mxu0 %vm45_vm0, %v15_v16 }
  0x2f   :  { %401 = vmatprep.subr.mxu0 %v459_v0 }
  0x32   :  { %402 = vmatpush3.xpose.msk.msra.mxu0 %vm45_vm0, %v14_v17 }
  0x33   :  { %403 = vmatprep.subr.mxu0 %v459_v0 }
  0x36   :  { %404 = vmatpush3.xpose.msk.msra.mxu0 %vm45_vm0, %v13_v18 }
  0x37   :  { %405 = vmatprep.subr.mxu0 %v459_v0 }
  0x3a   :  { %406 = vmatpush3.xpose.msk.msra.mxu0 %vm45_vm0, %v12_v19 }
  0x3b   :  { %407 = vmatprep.subr.mxu0 %v459_v0 }
  0x3e   :  { %408 = vmatpush3.xpose.msk.msra.mxu0 %vm45_vm0, %v11_v20 }
  0x41   :  { %410 = vmatmul.mubr.msk.f32.vlgmr.msra.gmra.mxu0 %vm45_vm0, %v499_v4 }
  0x42   :  { %412 = vmatprep.mubr.msk.f32.mxu0 %vm460_vm1, %v459_v0 }
  0x45   :  { %413 = vmatmul.mubr.msk.f32.gmra.mxu0 %vm45_vm0, %v28_v8 }
  0x46   :  { %415 = vmatprep.mubr.msk.f32.mxu0 %vm460_vm1, %v459_v0 }
  0x49   :  { %416 = vmatmul.mubr.msk.f32.gmra.mxu0 %vm45_vm0, %v508_v6 }
  0x80   :  { %v43_v24 = vpop.permute.xlu0 %42  ;;  %v33_v30 = vpop.permute.xlu1 %32 }
  0x84   :  { %v38_v28 = vpop.permute.xlu0 %37  ;;  %v196_v38 = vpop.permute.xlu1 %195 }
  0x88   :  { %v198_v40 = vpop.permute.xlu0 %197  ;;  %v200_v41 = vpop.permute.xlu1 %199 }
  0x8c   :  { %v185_v43 = vpop.permute.xlu0 %184  ;;  %v189_v44 = vpop.permute.xlu1 %188 }
  0x90   :  { %v193_v50 = vpop.permute.xlu1 %192 }
  0x91   :  { %v297_v57 = vpop.permute.xlu0 %296 }
  0x95   :  { %v301_v54 = vpop.permute.xlu1 %300 }
  0x97   :  { %v321_v7 = vpop.permute.xlu0 %320 }
  0x99   :  { %v305_v61 = vpop.permute.xlu1 %304 }
 0x101   :  { %v166_v25 = vpop.f32.mrf.mxu0 }
 0x102   :  { %v167_v35 = vadd.f32 %v166_v25, %v33_v30 }
 0x103   :  { %v411_v26 = vpop.f32.mrf.mxu0 }
 0x105   :  { %v171_v27 = vpop.f32.mrf.mxu0 }
 0x106   :  { %v172_v32 = vadd.f32 %v171_v27, %v38_v28 }
 0x107   :  { %v414_v29 = vpop.f32.mrf.mxu0 }
 0x109   :  { %v176_v31 = vpop.f32.mrf.mxu0 }
 0x10a   :  { %v177_v33 = vadd.f32 %v176_v31, %v43_v24 }
 0x10b   :  { %v417_v34 = vpop.f32.mrf.mxu0 }
 0x10c   :  { %447 = vtanh.f32 %v177_v33 }
 0x10d   :  { %449 = vtanh.f32 %v172_v32 }
 0x10e   :  { %451 = vtanh.f32 %v167_v35 }
 0x119   :  { %v448_v36 = vpop.eup %447 }
 0x11a   :  { %419 = vmatpush3.msk.msra.mxu1 %vm208_vm2, %v448_v36  ;;  %v450_v37 = vpop.eup %449 }
 0x11b   :  { %420 = vmatprep.subr.mxu1 %v459_v0  ;;  %v452_v39 = vpop.eup %451 }
 0x11c   :  { %421 = vmatpush3.msra.mxu1 %v450_v37 }
 0x11d   :  { %422 = vmatprep.subr.mxu1 %v459_v0 }
 0x11e   :  { %423 = vmatpush3.msra.mxu1 %v452_v39 }
 0x11f   :  { %425 = vmatmul.mubr.msk.f32.vlgmr.msra.gmra.mxu1 %vm201_vm3, %v196_v38 }
 0x120   :  { %427 = vmatprep.mubr.msk.f32.mxu1 %vm460_vm1, %v459_v0 }
 0x123   :  { %428 = vmatmul.mubr.msk.f32.gmra.mxu1 %vm201_vm3, %v198_v40 }
 0x124   :  { %430 = vmatprep.mubr.msk.f32.mxu1 %vm460_vm1, %v459_v0 }
 0x127   :  { %431 = vmatmul.mubr.msk.f32.gmra.mxu1 %vm201_vm3, %v200_v41 }
 0x1df   :  { %v278_v42 = vpop.f32.mrf.mxu1 }
 0x1e0   :  { %v279_v46 = vadd.f32 %v278_v42, %v185_v43 }
 0x1e1   :  { %v426_v45 = vpop.f32.mrf.mxu1 }
 0x1e3   :  { %v283_v47 = vpop.f32.mrf.mxu1 }
 0x1e4   :  { %v284_v48 = vadd.f32 %v283_v47, %v189_v44 }
 0x1e5   :  { %v429_v49 = vpop.f32.mrf.mxu1 }
 0x1e6   :  { %453 = vtanh.f32 %v284_v48 }
 0x1e7   :  { %455 = vtanh.f32 %v279_v46  ;;  %v288_v51 = vpop.f32.mrf.mxu1 }
 0x1e8   :  { %v289_v52 = vadd.f32 %v288_v51, %v193_v50 }
 0x1e9   :  { %v432_v53 = vpop.f32.mrf.mxu1 }
 0x1ea   :  { %457 = vtanh.f32 %v289_v52 }
 0x1f3   :  { %v454_v55 = vpop.eup %453 }
 0x1f4   :  { %v456_v56 = vpop.eup %455  ;;  %v308_v58 = vmul.f32 %v454_v55, %v301_v54 }
 0x1f5   :  { %v307_v60 = vmul.f32 %v456_v56, %v297_v57 }
 0x1f7   :  { %v458_v59 = vpop.eup %457  ;;  %v310_v63 = vadd.f32 %v308_v58, %v307_v60 }
 0x1f8   :  { %v309_v62 = vmul.f32 %v458_v59, %v305_v61 }
 0x1fa   :  { %v311_v0 = vsel %vm208_vm2, %v309_v62, 0.0 }
 0x1fb   :  { %v312_v1 = vadd.f32 %v311_v0, %v310_v63 }
 0x1fd   :  { %v313_v2 = vrot.slane %v312_v1, 4 }
 0x1ff   :  { %v314_v3 = vadd.f32 %v313_v2, %v312_v1 }
 0x201   :  { %v315_v4 = vrot.slane %v314_v3, 2 }
 0x203   :  { %v316_v5 = vadd.f32 %v315_v4, %v314_v3 }
 0x205   :  { %v317_v6 = vrot.slane %v316_v5, 1 }
 0x207   :  { %v318_v8 = vadd.f32 %v317_v6, %v316_v5 }
 0x209   :  { %v323_v9 = vadd.f32 %v321_v7, %v318_v8 }
 0x20b   :  { %324 = vst [vmem:[%s610_s2] sm:$0x1] %v323_v9 }

</bundles_post_ra>
